<compile_context>
chip_gen: v5e
topology: v5e:2x2
jax: 0.10.0
libtpu: 0.0.40
codegen_flags: <defaults>
</compile_context>

<pallas_src>
import jax
import jax.numpy as jnp
from jax.experimental import pallas as pl
from jax.experimental.pallas import tpu as pltpu

_LANES = 128
_N_STATS = 3     # per pair: [sum(scale[w>0]), count(w>0), count(scale != 0)]


def _round_up(x, m):
    return -(-x // m) * m


def _device_kind():
    try:
        return (getattr(jax.devices()[0], "device_kind", "") or "").lower()
    except Exception:
        return ""


def _tensorcores_per_chip(kind):
    # Chips where the "parallel" grid axis shards work across 2 TensorCores.
    # Misdetection is correctness-safe (only changes the outer split factor).
    return 2 if any(t in kind for t in ("v4", "v5p", "v7", "7x")) else 1


def _pick_tile_m(kind):
    # v6e/v7x: 2048-row tiles (1 MiB/stream, 12 MiB double-buffered for the 6
    # streams) fit the default scoped VMEM easily once the accumulator is
    # vreg-sized.  Older gens (notably v5e, 16 MiB scoped default) get 1024.
    return 2048 if any(t in kind for t in ("v6", "v7", "7x")) else 1024


def _wmse_kernel(pred_e_ref, gt_e_ref, w_e_ref,
                 pred_l_ref, gt_l_ref, w_l_ref,
                 out_ref, acc_ref):
    """Fused endo+lyso weighted-MSE statistics.

    acc_ref: (2*_N_STATS, 8, 128) f32 scratch.  Per grid step each statistic's
    (tile_m, 128) tile is reduced to one (8, 128) vreg in-registers and a
    single RMW per statistic updates scratch.  The epilogue stores the whole
    slab with one unmasked lane-dense store; the tiny final reduce happens in
    the JAX wrapper.
    """
    i = pl.program_id(1)                 # reduction (inner) axis
    n_inner = pl.num_programs(1)

    @pl.when(i == 0)
    def _init():
        acc_ref[...] = jnp.zeros_like(acc_ref)

    tile_m = pred_e_ref.shape[0]
    groups = tile_m // 8

    def reduce_rows(x):
        # (tile_m, 128) -> (8, 128): pure VPU vreg add tree (no XLU traffic).
        return jnp.sum(x.reshape(groups, 8, _LANES), axis=0)

    def accumulate(base, p_ref, t_ref, w_ref):
        p = p_ref[...].astype(jnp.float32)
        t = t_ref[...].astype(jnp.float32)
        w = w_ref[...].astype(jnp.float32)
        diff = p - t
        scale = w * diff * diff                       # weights * (pred-target)^2
        pos = w > jnp.float32(0.0)                    # torch.gt(weights, 0)
        acc_ref[base + 0] += reduce_rows(jnp.where(pos, scale, 0.0))  # sum(scale[w>0])
        acc_ref[base + 1] += reduce_rows(pos.astype(jnp.float32))     # count(w>0)
        acc_ref[base + 2] += reduce_rows(
            (scale != jnp.float32(0.0)).astype(jnp.float32))          # count(scale!=0)

    accumulate(0, pred_e_ref, gt_e_ref, w_e_ref)
    accumulate(_N_STATS, pred_l_ref, gt_l_ref, w_l_ref)

    @pl.when(i == n_inner - 1)
    def _finalize():
        out_ref[...] = acc_ref[...]      # single unmasked lane-dense store


def _weighted_stats_pair(pred_e, gt_e, w_e, pred_l, gt_l, w_l):
    """One fused Pallas call; returns the 6 scalar statistics (f32, shape (6,))."""
    n_e = pred_e.size
    n_l = pred_l.size
    n_max = max(n_e, n_l)

    kind = _device_kind()
    n_cores = _tensorcores_per_chip(kind)

    rows_needed = _round_up(-(-n_max // _LANES), 8)      # multiple of 8 sublanes
    tile_m = min(_pick_tile_m(kind), rows_needed)
    # Pad rows so the row axis splits exactly into n_cores * n_inner tiles; on
    # 2-TC chips this guarantees both cores always get work (never falls back
    # to a single-core reduction because of an odd tile count).
    rows = _round_up(rows_needed, n_cores * tile_m)
    n_tiles = rows // tile_m
    n_outer = n_cores
    n_inner = n_tiles // n_outer

    def prep(x):
        x = x.reshape(-1)
        pad = rows * _LANES - x.size
        if pad:
            # TODO(synk): for ragged sizes this pad is one extra HBM
            # read+write per stream; an in-kernel tail mask driven by a
            # scalar-prefetched element count would avoid it.  Zero padding is
            # exact (zero weight/pred/target contributes nothing to any stat).
            x = jnp.pad(x, (0, pad))
        return x.reshape(rows, _LANES)

    ins = [prep(a) for a in (pred_e, gt_e, w_e, pred_l, gt_l, w_l)]

    in_spec = pl.BlockSpec((tile_m, _LANES), lambda o, i: (o * n_inner + i, 0))
    out_spec = pl.BlockSpec((None, 2 * _N_STATS, 8, _LANES),
                            lambda o, i: (o, 0, 0, 0))

    out_elems = n_outer * 2 * _N_STATS * 8 * _LANES
    bytes_accessed = sum(a.size * a.dtype.itemsize for a in ins) + out_elems * 4
    cost = pl.CostEstimate(flops=int(2 * 10 * rows * _LANES),
                           transcendentals=0,
                           bytes_accessed=int(bytes_accessed))

    # 6 input streams x 2 pipeline buffers x tile bytes, plus scratch/output
    # and headroom; never set below the smallest per-gen default (16 MiB).
    tile_bytes = tile_m * _LANES * 4
    vmem_limit = max(6 * 2 * tile_bytes + (4 << 20), 16 << 20)

    out = pl.pallas_call(
        _wmse_kernel,
        out_shape=jax.ShapeDtypeStruct((n_outer, 2 * _N_STATS, 8, _LANES),
                                       jnp.float32),
        grid_spec=pltpu.PrefetchScalarGridSpec(
            num_scalar_prefetch=0,
            grid=(n_outer, n_inner),
            in_specs=[in_spec] * 6,
            out_specs=out_spec,
            scratch_shapes=[pltpu.VMEM((2 * _N_STATS, 8, _LANES), jnp.float32)],
        ),
        compiler_params=pltpu.CompilerParams(
            dimension_semantics=("parallel", "arbitrary"),
            vmem_limit_bytes=int(vmem_limit)),
        cost_estimate=cost,
    )(*ins)

    # (n_outer, 6, 8, 128) -> (6,): tiny final reduce in plain JAX.
    return jnp.sum(out, axis=(0, 2, 3))


def _finish(masked_sum, n_pos, n_nz):
    # torch: if any nonzero scale -> mean(scale[weights > 0]); else mean(scale).
    # When n_nz == 0 every scale element is exactly zero, so mean(scale) == 0.
    # (NaN scale entries compare != 0 and take the masked branch, like torch.)
    # If n_nz > 0 but n_pos == 0 (only possible with negative weights),
    # 0/0 = NaN matches torch.mean of an empty masked_select.
    return jnp.where(n_nz > jnp.float32(0.0), masked_sum / n_pos, jnp.float32(0.0))


@jax.jit
def weighted_mse_loss(pred_endo, gt_endo, weights_endo,
                      pred_lyso, gt_lyso, weights_lyso):
    stats = _weighted_stats_pair(pred_endo, gt_endo, weights_endo,
                                 pred_lyso, gt_lyso, weights_lyso)
    loss_endo = _finish(stats[0], stats[1], stats[2])
    loss_lyso = _finish(stats[3], stats[4], stats[5])
    return loss_endo + loss_lyso


def _reference(pred, target, weights):
    scale = weights * (pred - target) ** 2
    any_nz = jnp.any(scale != 0)
    pos = weights > 0
    masked_mean = jnp.sum(jnp.where(pos, scale, 0.0)) / jnp.sum(pos)
    return jnp.where(any_nz, masked_mean, jnp.mean(scale))


if __name__ == "__main__":
    key = jax.random.PRNGKey(0)
    k = jax.random.split(key, 6)

    shape = (2, 4, 16, 16)   # small NCHW-like prediction maps

    pred_endo = jax.random.normal(k[0], shape, jnp.float32)
    gt_endo = jax.random.normal(k[1], shape, jnp.float32)
    # sparse non-negative weights (some zeros, some positive)
    weights_endo = jnp.where(jax.random.uniform(k[2], shape) > 0.5,
                             jax.random.uniform(k[2], shape), 0.0)

    pred_lyso = jax.random.normal(k[3], shape, jnp.float32)
    gt_lyso = jax.random.normal(k[4], shape, jnp.float32)
    weights_lyso = jnp.where(jax.random.uniform(k[5], shape) > 0.5,
                             jax.random.uniform(k[5], shape), 0.0)

    out = weighted_mse_loss(pred_endo, gt_endo, weights_endo,
                            pred_lyso, gt_lyso, weights_lyso)
    out = jax.block_until_ready(out)

    ref = (_reference(pred_endo, gt_endo, weights_endo)
           + _reference(pred_lyso, gt_lyso, weights_lyso))
    assert jnp.allclose(out, ref, rtol=1e-5, atol=1e-6), (out, ref)

    print("KERNEL_OK")
</pallas_src>

<mosaic_0001>
module attributes {stable_mosaic.version = 11 : i64} {
  func.func @_wmse_kernel(%arg0: i32, %arg1: i32, %arg2: memref<16x128xf32, #tpu.memory_space<vmem>>, %arg3: memref<16x128xf32, #tpu.memory_space<vmem>>, %arg4: memref<16x128xf32, #tpu.memory_space<vmem>>, %arg5: memref<16x128xf32, #tpu.memory_space<vmem>>, %arg6: memref<16x128xf32, #tpu.memory_space<vmem>>, %arg7: memref<16x128xf32, #tpu.memory_space<vmem>>, %arg8: memref<1x6x8x128xf32, #tpu.memory_space<vmem>>, %arg9: memref<6x8x128xf32, #tpu.memory_space<vmem>>) attributes {dimension_semantics = [#tpu.dimension_semantics<parallel>, #tpu.dimension_semantics<arbitrary>], iteration_bounds = array<i64: 1, 1>, scalar_prefetch = 0 : i64, scratch_operands = 1 : i64, tpu.core_type = #tpu.core_type<tc>, window_params = [{transform_indices = @transform_0, window_bounds = array<i64: 16, 128>}, {transform_indices = @transform_1, window_bounds = array<i64: 16, 128>}, {transform_indices = @transform_2, window_bounds = array<i64: 16, 128>}, {transform_indices = @transform_3, window_bounds = array<i64: 16, 128>}, {transform_indices = @transform_4, window_bounds = array<i64: 16, 128>}, {transform_indices = @transform_5, window_bounds = array<i64: 16, 128>}, {transform_indices = @transform_6, window_bounds = array<i64: 1, 6, 8, 128>}]} {
    %c0_i32 = arith.constant 0 : i32
    %0 = arith.cmpi eq, %arg1, %c0_i32 : i32
    %1 = arith.extui %0 : i1 to i32
    %c0_i32_0 = arith.constant 0 : i32
    %2 = arith.cmpi ne, %1, %c0_i32_0 : i32
    scf.if %2 {
      %cst_56 = arith.constant 0.000000e+00 : f32
      %86 = vector.broadcast %cst_56 : f32 to vector<6x8x128xf32>
      %c0_57 = arith.constant 0 : index
      %c0_58 = arith.constant 0 : index
      %c0_59 = arith.constant 0 : index
      %87 = vector.load %arg9[%c0_57, %c0_58, %c0_59] : memref<6x8x128xf32, #tpu.memory_space<vmem>>, vector<6x8x128xf32>
      tpu.vector_store %arg9[%c0_57, %c0_58, %c0_59], %86 {strides = array<i32>} : memref<6x8x128xf32, #tpu.memory_space<vmem>>, vector<6x8x128xf32>,
    } else {
    }
    %c0 = arith.constant 0 : index
    %c0_1 = arith.constant 0 : index
    %3 = vector.load %arg2[%c0, %c0_1] : memref<16x128xf32, #tpu.memory_space<vmem>>, vector<16x128xf32>
    %c0_2 = arith.constant 0 : index
    %c0_3 = arith.constant 0 : index
    %4 = vector.load %arg3[%c0_2, %c0_3] : memref<16x128xf32, #tpu.memory_space<vmem>>, vector<16x128xf32>
    %c0_4 = arith.constant 0 : index
    %c0_5 = arith.constant 0 : index
    %5 = vector.load %arg4[%c0_4, %c0_5] : memref<16x128xf32, #tpu.memory_space<vmem>>, vector<16x128xf32>
    %6 = arith.subf %3, %4 : vector<16x128xf32>
    %7 = arith.mulf %5, %6 : vector<16x128xf32>
    %8 = arith.mulf %7, %6 : vector<16x128xf32>
    %cst = arith.constant 0.000000e+00 : f32
    %9 = vector.broadcast %cst : f32 to vector<16x128xf32>
    %10 = arith.cmpf ogt, %5, %9 : vector<16x128xf32>
    %c0_6 = arith.constant 0 : index
    %c0_7 = arith.constant 0 : index
    %c0_8 = arith.constant 0 : index
    %11 = vector.load %arg9[%c0_6, %c0_7, %c0_8] : memref<6x8x128xf32, #tpu.memory_space<vmem>>, vector<1x8x128xf32>
    %12 = vector.shape_cast %11 : vector<1x8x128xf32> to vector<8x128xf32>
    %cst_9 = arith.constant 0.000000e+00 : f32
    %13 = vector.broadcast %cst_9 : f32 to vector<16x128xf32>
    %14 = arith.select %10, %8, %13 : vector<16x128xi1>, vector<16x128xf32>
    %15 = vector.shape_cast %14 : vector<16x128xf32> to vector<2x8x128xf32>
    %cst_10 = arith.constant dense<0.000000e+00> : vector<8x128xf32>
    %16 = vector.multi_reduction <add>, %15, %cst_10 [0] : vector<2x8x128xf32> to vector<8x128xf32>
    %17 = arith.addf %12, %16 : vector<8x128xf32>
    %c0_11 = arith.constant 0 : index
    %c0_12 = arith.constant 0 : index
    %c0_13 = arith.constant 0 : index
    %18 = vector.load %arg9[%c0_11, %c0_12, %c0_13] : memref<6x8x128xf32, #tpu.memory_space<vmem>>, vector<1x8x128xf32>
    %19 = vector.shape_cast %18 : vector<1x8x128xf32> to vector<8x128xf32>
    %20 = vector.shape_cast %17 : vector<8x128xf32> to vector<1x8x128xf32>
    tpu.vector_store %arg9[%c0_11, %c0_12, %c0_13], %20 {strides = array<i32>} : memref<6x8x128xf32, #tpu.memory_space<vmem>>, vector<1x8x128xf32>,
    %c1 = arith.constant 1 : index
    %c0_14 = arith.constant 0 : index
    %c0_15 = arith.constant 0 : index
    %21 = vector.load %arg9[%c1, %c0_14, %c0_15] : memref<6x8x128xf32, #tpu.memory_space<vmem>>, vector<1x8x128xf32>
    %22 = vector.shape_cast %21 : vector<1x8x128xf32> to vector<8x128xf32>
    %23 = arith.extui %10 : vector<16x128xi1> to vector<16x128xi32>
    %24 = arith.sitofp %23 : vector<16x128xi32> to vector<16x128xf32>
    %25 = vector.shape_cast %24 : vector<16x128xf32> to vector<2x8x128xf32>
    %cst_16 = arith.constant dense<0.000000e+00> : vector<8x128xf32>
    %26 = vector.multi_reduction <add>, %25, %cst_16 [0] : vector<2x8x128xf32> to vector<8x128xf32>
    %27 = arith.addf %22, %26 : vector<8x128xf32>
    %c1_17 = arith.constant 1 : index
    %c0_18 = arith.constant 0 : index
    %c0_19 = arith.constant 0 : index
    %28 = vector.load %arg9[%c1_17, %c0_18, %c0_19] : memref<6x8x128xf32, #tpu.memory_space<vmem>>, vector<1x8x128xf32>
    %29 = vector.shape_cast %28 : vector<1x8x128xf32> to vector<8x128xf32>
    %30 = vector.shape_cast %27 : vector<8x128xf32> to vector<1x8x128xf32>
    tpu.vector_store %arg9[%c1_17, %c0_18, %c0_19], %30 {strides = array<i32>} : memref<6x8x128xf32, #tpu.memory_space<vmem>>, vector<1x8x128xf32>,
    %c2 = arith.constant 2 : index
    %c0_20 = arith.constant 0 : index
    %c0_21 = arith.constant 0 : index
    %31 = vector.load %arg9[%c2, %c0_20, %c0_21] : memref<6x8x128xf32, #tpu.memory_space<vmem>>, vector<1x8x128xf32>
    %32 = vector.shape_cast %31 : vector<1x8x128xf32> to vector<8x128xf32>
    %cst_22 = arith.constant 0.000000e+00 : f32
    %33 = vector.broadcast %cst_22 : f32 to vector<16x128xf32>
    %34 = arith.cmpf one, %8, %33 : vector<16x128xf32>
    %35 = arith.extui %34 : vector<16x128xi1> to vector<16x128xi32>
    %36 = arith.sitofp %35 : vector<16x128xi32> to vector<16x128xf32>
    %37 = vector.shape_cast %36 : vector<16x128xf32> to vector<2x8x128xf32>
    %cst_23 = arith.constant dense<0.000000e+00> : vector<8x128xf32>
    %38 = vector.multi_reduction <add>, %37, %cst_23 [0] : vector<2x8x128xf32> to vector<8x128xf32>
    %39 = arith.addf %32, %38 : vector<8x128xf32>
    %c2_24 = arith.constant 2 : index
    %c0_25 = arith.constant 0 : index
    %c0_26 = arith.constant 0 : index
    %40 = vector.load %arg9[%c2_24, %c0_25, %c0_26] : memref<6x8x128xf32, #tpu.memory_space<vmem>>, vector<1x8x128xf32>
    %41 = vector.shape_cast %40 : vector<1x8x128xf32> to vector<8x128xf32>
    %42 = vector.shape_cast %39 : vector<8x128xf32> to vector<1x8x128xf32>
    tpu.vector_store %arg9[%c2_24, %c0_25, %c0_26], %42 {strides = array<i32>} : memref<6x8x128xf32, #tpu.memory_space<vmem>>, vector<1x8x128xf32>,
    %c0_27 = arith.constant 0 : index
    %c0_28 = arith.constant 0 : index
    %43 = vector.load %arg5[%c0_27, %c0_28] : memref<16x128xf32, #tpu.memory_space<vmem>>, vector<16x128xf32>
    %c0_29 = arith.constant 0 : index
    %c0_30 = arith.constant 0 : index
    %44 = vector.load %arg6[%c0_29, %c0_30] : memref<16x128xf32, #tpu.memory_space<vmem>>, vector<16x128xf32>
    %c0_31 = arith.constant 0 : index
    %c0_32 = arith.constant 0 : index
    %45 = vector.load %arg7[%c0_31, %c0_32] : memref<16x128xf32, #tpu.memory_space<vmem>>, vector<16x128xf32>
    %46 = arith.subf %43, %44 : vector<16x128xf32>
    %47 = arith.mulf %45, %46 : vector<16x128xf32>
    %48 = arith.mulf %47, %46 : vector<16x128xf32>
    %cst_33 = arith.constant 0.000000e+00 : f32
    %49 = vector.broadcast %cst_33 : f32 to vector<16x128xf32>
    %50 = arith.cmpf ogt, %45, %49 : vector<16x128xf32>
    %c3 = arith.constant 3 : index
    %c0_34 = arith.constant 0 : index
    %c0_35 = arith.constant 0 : index
    %51 = vector.load %arg9[%c3, %c0_34, %c0_35] : memref<6x8x128xf32, #tpu.memory_space<vmem>>, vector<1x8x128xf32>
    %52 = vector.shape_cast %51 : vector<1x8x128xf32> to vector<8x128xf32>
    %cst_36 = arith.constant 0.000000e+00 : f32
    %53 = vector.broadcast %cst_36 : f32 to vector<16x128xf32>
    %54 = arith.select %50, %48, %53 : vector<16x128xi1>, vector<16x128xf32>
    %55 = vector.shape_cast %54 : vector<16x128xf32> to vector<2x8x128xf32>
    %cst_37 = arith.constant dense<0.000000e+00> : vector<8x128xf32>
    %56 = vector.multi_reduction <add>, %55, %cst_37 [0] : vector<2x8x128xf32> to vector<8x128xf32>
    %57 = arith.addf %52, %56 : vector<8x128xf32>
    %c3_38 = arith.constant 3 : index
    %c0_39 = arith.constant 0 : index
    %c0_40 = arith.constant 0 : index
    %58 = vector.load %arg9[%c3_38, %c0_39, %c0_40] : memref<6x8x128xf32, #tpu.memory_space<vmem>>, vector<1x8x128xf32>
    %59 = vector.shape_cast %58 : vector<1x8x128xf32> to vector<8x128xf32>
    %60 = vector.shape_cast %57 : vector<8x128xf32> to vector<1x8x128xf32>
    tpu.vector_store %arg9[%c3_38, %c0_39, %c0_40], %60 {strides = array<i32>} : memref<6x8x128xf32, #tpu.memory_space<vmem>>, vector<1x8x128xf32>,
    %c4 = arith.constant 4 : index
    %c0_41 = arith.constant 0 : index
    %c0_42 = arith.constant 0 : index
    %61 = vector.load %arg9[%c4, %c0_41, %c0_42] : memref<6x8x128xf32, #tpu.memory_space<vmem>>, vector<1x8x128xf32>
    %62 = vector.shape_cast %61 : vector<1x8x128xf32> to vector<8x128xf32>
    %63 = arith.extui %50 : vector<16x128xi1> to vector<16x128xi32>
    %64 = arith.sitofp %63 : vector<16x128xi32> to vector<16x128xf32>
    %65 = vector.shape_cast %64 : vector<16x128xf32> to vector<2x8x128xf32>
    %cst_43 = arith.constant dense<0.000000e+00> : vector<8x128xf32>
    %66 = vector.multi_reduction <add>, %65, %cst_43 [0] : vector<2x8x128xf32> to vector<8x128xf32>
    %67 = arith.addf %62, %66 : vector<8x128xf32>
    %c4_44 = arith.constant 4 : index
    %c0_45 = arith.constant 0 : index
    %c0_46 = arith.constant 0 : index
    %68 = vector.load %arg9[%c4_44, %c0_45, %c0_46] : memref<6x8x128xf32, #tpu.memory_space<vmem>>, vector<1x8x128xf32>
    %69 = vector.shape_cast %68 : vector<1x8x128xf32> to vector<8x128xf32>
    %70 = vector.shape_cast %67 : vector<8x128xf32> to vector<1x8x128xf32>
    tpu.vector_store %arg9[%c4_44, %c0_45, %c0_46], %70 {strides = array<i32>} : memref<6x8x128xf32, #tpu.memory_space<vmem>>, vector<1x8x128xf32>,
    %c5 = arith.constant 5 : index
    %c0_47 = arith.constant 0 : index
    %c0_48 = arith.constant 0 : index
    %71 = vector.load %arg9[%c5, %c0_47, %c0_48] : memref<6x8x128xf32, #tpu.memory_space<vmem>>, vector<1x8x128xf32>
    %72 = vector.shape_cast %71 : vector<1x8x128xf32> to vector<8x128xf32>
    %cst_49 = arith.constant 0.000000e+00 : f32
    %73 = vector.broadcast %cst_49 : f32 to vector<16x128xf32>
    %74 = arith.cmpf one, %48, %73 : vector<16x128xf32>
    %75 = arith.extui %74 : vector<16x128xi1> to vector<16x128xi32>
    %76 = arith.sitofp %75 : vector<16x128xi32> to vector<16x128xf32>
    %77 = vector.shape_cast %76 : vector<16x128xf32> to vector<2x8x128xf32>
    %cst_50 = arith.constant dense<0.000000e+00> : vector<8x128xf32>
    %78 = vector.multi_reduction <add>, %77, %cst_50 [0] : vector<2x8x128xf32> to vector<8x128xf32>
    %79 = arith.addf %72, %78 : vector<8x128xf32>
    %c5_51 = arith.constant 5 : index
    %c0_52 = arith.constant 0 : index
    %c0_53 = arith.constant 0 : index
    %80 = vector.load %arg9[%c5_51, %c0_52, %c0_53] : memref<6x8x128xf32, #tpu.memory_space<vmem>>, vector<1x8x128xf32>
    %81 = vector.shape_cast %80 : vector<1x8x128xf32> to vector<8x128xf32>
    %82 = vector.shape_cast %79 : vector<8x128xf32> to vector<1x8x128xf32>
    tpu.vector_store %arg9[%c5_51, %c0_52, %c0_53], %82 {strides = array<i32>} : memref<6x8x128xf32, #tpu.memory_space<vmem>>, vector<1x8x128xf32>,
    %c0_i32_54 = arith.constant 0 : i32
    %83 = arith.cmpi eq, %arg1, %c0_i32_54 : i32
    %84 = arith.extui %83 : i1 to i32
    %c0_i32_55 = arith.constant 0 : i32
    %85 = arith.cmpi ne, %84, %c0_i32_55 : i32
    scf.if %85 {
      %c0_56 = arith.constant 0 : index
      %c0_57 = arith.constant 0 : index
      %c0_58 = arith.constant 0 : index
      %86 = vector.load %arg9[%c0_56, %c0_57, %c0_58] : memref<6x8x128xf32, #tpu.memory_space<vmem>>, vector<6x8x128xf32>
      %c0_59 = arith.constant 0 : index
      %c0_60 = arith.constant 0 : index
      %c0_61 = arith.constant 0 : index
      %c0_62 = arith.constant 0 : index
      %87 = vector.load %arg8[%c0_59, %c0_60, %c0_61, %c0_62] : memref<1x6x8x128xf32, #tpu.memory_space<vmem>>, vector<1x6x8x128xf32>
      %88 = vector.shape_cast %87 : vector<1x6x8x128xf32> to vector<6x8x128xf32>
      %89 = vector.shape_cast %86 : vector<6x8x128xf32> to vector<1x6x8x128xf32>
      tpu.vector_store %arg8[%c0_59, %c0_60, %c0_61, %c0_62], %89 {strides = array<i32>} : memref<1x6x8x128xf32, #tpu.memory_space<vmem>>, vector<1x6x8x128xf32>,
    } else {
    }
    return
  }
  func.func @transform_0(%arg0: i32, %arg1: i32) -> (i32, i32) {
    %c1_i32 = arith.constant 1 : i32
    %0 = arith.muli %arg0, %c1_i32 : i32
    %1 = arith.addi %0, %arg1 : i32
    %c0_i32 = arith.constant 0 : i32
    %c0_i32_0 = arith.constant 0 : i32
    return %1, %c0_i32 : i32, i32
  }
  func.func @transform_1(%arg0: i32, %arg1: i32) -> (i32, i32) {
    %c1_i32 = arith.constant 1 : i32
    %0 = arith.muli %arg0, %c1_i32 : i32
    %1 = arith.addi %0, %arg1 : i32
    %c0_i32 = arith.constant 0 : i32
    %c0_i32_0 = arith.constant 0 : i32
    return %1, %c0_i32 : i32, i32
  }
  func.func @transform_2(%arg0: i32, %arg1: i32) -> (i32, i32) {
    %c1_i32 = arith.constant 1 : i32
    %0 = arith.muli %arg0, %c1_i32 : i32
    %1 = arith.addi %0, %arg1 : i32
    %c0_i32 = arith.constant 0 : i32
    %c0_i32_0 = arith.constant 0 : i32
    return %1, %c0_i32 : i32, i32
  }
  func.func @transform_3(%arg0: i32, %arg1: i32) -> (i32, i32) {
    %c1_i32 = arith.constant 1 : i32
    %0 = arith.muli %arg0, %c1_i32 : i32
    %1 = arith.addi %0, %arg1 : i32
    %c0_i32 = arith.constant 0 : i32
    %c0_i32_0 = arith.constant 0 : i32
    return %1, %c0_i32 : i32, i32
  }
  func.func @transform_4(%arg0: i32, %arg1: i32) -> (i32, i32) {
    %c1_i32 = arith.constant 1 : i32
    %0 = arith.muli %arg0, %c1_i32 : i32
    %1 = arith.addi %0, %arg1 : i32
    %c0_i32 = arith.constant 0 : i32
    %c0_i32_0 = arith.constant 0 : i32
    return %1, %c0_i32 : i32, i32
  }
  func.func @transform_5(%arg0: i32, %arg1: i32) -> (i32, i32) {
    %c1_i32 = arith.constant 1 : i32
    %0 = arith.muli %arg0, %c1_i32 : i32
    %1 = arith.addi %0, %arg1 : i32
    %c0_i32 = arith.constant 0 : i32
    %c0_i32_0 = arith.constant 0 : i32
    return %1, %c0_i32 : i32, i32
  }
  func.func @transform_6(%arg0: i32, %arg1: i32) -> (i32, i32, i32, i32) {
    %c0_i32 = arith.constant 0 : i32
    %c0_i32_0 = arith.constant 0 : i32
    %c0_i32_1 = arith.constant 0 : i32
    %c0_i32_2 = arith.constant 0 : i32
    return %arg0, %c0_i32, %c0_i32_0, %c0_i32_1 : i32, i32, i32, i32
  }
}

</mosaic_0001>

<bundles_post_ra>
// kernel: weighted_mse_loss.1
= control target key start
LH: loop header
LB: loop body
LE: loop exit
PB: predicated region body
PF: predicated region fallthrough
CT: control target
= control target key end

     0   :  { %v310_v12 = vmov 0.0   ;;  %s408_s0 = inlined_call_operand.vmem [shape: f32[16,128], index: 0, kind: input, shape index: {}]   ;;  %s409_s1 = inlined_call_operand.vmem [shape: f32[16,128], index: 1, kind: input, shape index: {}]   ;;  %s410_s2 = inlined_call_operand.vmem [shape: f32[16,128], index: 2, kind: input, shape index: {}]   ;;  %s411_s3 = inlined_call_operand.vmem [shape: f32[16,128], index: 3, kind: input, shape index: {}]   ;;  %s412_s4 = inlined_call_operand.vmem [shape: f32[16,128], index: 4, kind: input, shape index: {}]   ;;  %s413_s5 = inlined_call_operand.vmem [shape: f32[16,128], index: 5, kind: input, shape index: {}]   ;;  %s414_s6 = inlined_call_operand.vmem [shape: f32[1,6,8,128], index: 6, kind: output, shape index: {}]  }
   0x1   :  { %v165_v0 = vld [vmem:[%s408_s0] sm:$0xff]  ;;  %v166_v1 = vld [vmem:[%s408_s0 + $0x8] sm:$0xff] }
   0x2   :  { %v167_v2 = vld [vmem:[%s409_s1] sm:$0xff]  ;;  %v168_v3 = vld [vmem:[%s409_s1 + $0x8] sm:$0xff] }
   0x3   :  { %v169_v4 = vld [vmem:[%s410_s2] sm:$0xff]  ;;  %v170_v5 = vld [vmem:[%s410_s2 + $0x8] sm:$0xff]  ;;  %v171_v6 = vsub.f32 %v165_v0, %v167_v2  ;;  %v172_v7 = vsub.f32 %v166_v1, %v168_v3 }
   0x4   :  { %vm177_vm0 = vcmp.gt.f32.partialorder %v169_v4, 0.0  ;;  %vm178_vm1 = vcmp.gt.f32.partialorder %v170_v5, 0.0  ;;  %v205_v8 = vld [vmem:[%s411_s3] sm:$0xff]  ;;  %v206_v9 = vld [vmem:[%s411_s3 + $0x8] sm:$0xff] }
   0x5   :  { %v207_v10 = vld [vmem:[%s412_s4] sm:$0xff]  ;;  %v173_v11 = vmul.f32 %v171_v6, %v169_v4  ;;  %v301_v13 = vsel %vm177_vm0, 1.0, %v310_v12  ;;  %v302_v14 = vsel %vm178_vm1, 1.0, %v310_v12  ;;  %v208_v15 = vld [vmem:[%s412_s4 + $0x8] sm:$0xff]  ;;  %v174_v19 = vmul.f32 %v172_v7, %v170_v5 }
   0x6   :  { %v209_v16 = vld [vmem:[%s413_s5] sm:$0xff]  ;;  %v210_v17 = vld [vmem:[%s413_s5 + $0x8] sm:$0xff]  ;;  %v211_v18 = vsub.f32 %v205_v8, %v207_v10  ;;  %v191_v20 = vadd.f32 %v302_v14, %v301_v13  ;;  %v212_v21 = vsub.f32 %v206_v9, %v208_v15 }
   0x7   :  { %vm217_vm2 = vcmp.gt.f32.partialorder %v209_v16, 0.0  ;;  %v175_v22 = vmul.f32 %v173_v11, %v171_v6  ;;  %vm218_vm3 = vcmp.gt.f32.partialorder %v210_v17, 0.0  ;;  %v176_v25 = vmul.f32 %v174_v19, %v172_v7 }
   0x8   :  { %v213_v23 = vmul.f32 %v211_v18, %v209_v16  ;;  %v305_v24 = vsel %vm217_vm2, 1.0, %v310_v12  ;;  %256 = vst [vmem:[%s414_s6 + $0x8] sm:$0xff] %v191_v20  ;;  %v214_v26 = vmul.f32 %v212_v21, %v210_v17  ;;  %v306_v27 = vsel %vm218_vm3, 1.0, %v310_v12 }
   0x9   :  { %v180_v28 = vsel %vm177_vm0, %v175_v22, 0.0  ;;  %vm196_vm4 = vcmp.ne.f32.partialorder %v175_v22, 0.0  ;;  %v232_v30 = vadd.f32 %v306_v27, %v305_v24  ;;  %v181_v31 = vsel %vm178_vm1, %v176_v25, 0.0 }
   0xa   :  { %v215_v29 = vmul.f32 %v213_v23, %v211_v18  ;;  %vm197_vm5 = vcmp.ne.f32.partialorder %v176_v25, 0.0  ;;  %v303_v32 = vsel %vm196_vm4, 1.0, %v310_v12  ;;  %v216_v33 = vmul.f32 %v214_v26, %v212_v21 }
   0xb   :  { %v182_v34 = vadd.f32 %v181_v31, %v180_v28  ;;  %v304_v35 = vsel %vm197_vm5, 1.0, %v310_v12  ;;  %259 = vst [vmem:[%s414_s6 + $0x20] sm:$0xff] %v232_v30 }
   0xc   :  { %v221_v36 = vsel %vm217_vm2, %v215_v29, 0.0  ;;  %vm237_vm6 = vcmp.ne.f32.partialorder %v215_v29, 0.0  ;;  %v202_v37 = vadd.f32 %v304_v35, %v303_v32  ;;  %v222_v38 = vsel %vm218_vm3, %v216_v33, 0.0 }
   0xd   :  { %vm238_vm7 = vcmp.ne.f32.partialorder %v216_v33, 0.0  ;;  %v307_v39 = vsel %vm237_vm6, 1.0, %v310_v12  ;;  %255 = vst [vmem:[%s414_s6] sm:$0xff] %v182_v34  ;;  %v223_v40 = vadd.f32 %v222_v38, %v221_v36 }
   0xe   :  { %v308_v41 = vsel %vm238_vm7, 1.0, %v310_v12  ;;  %257 = vst [vmem:[%s414_s6 + $0x10] sm:$0xff] %v202_v37 }
   0xf   :  { %v243_v42 = vadd.f32 %v308_v41, %v307_v39  ;;  %258 = vst [vmem:[%s414_s6 + $0x18] sm:$0xff] %v223_v40 }
  0x11   :  { %260 = vst [vmem:[%s414_s6 + $0x28] sm:$0xff] %v243_v42 }

</bundles_post_ra>
